<compile_context>
chip_gen: v7x
topology: tpu7x:2x2x1
jax: 0.10.0
libtpu: 0.0.40
codegen_flags: <defaults>
</compile_context>

<pallas_src>
import jax
import jax.numpy as jnp
from jax.experimental import pallas as pl
from jax.experimental.pallas import tpu as pltpu

_LANES = (1024, 512, 256, 128)   # preferred lane-dense last dims (multiples of 128)
_TM_MAX = 512                    # row-tile cap: safe for every TPU generation


def _round_up(n: int, m: int) -> int:
    return ((n + m - 1) // m) * m


def _sublane_multiple(dtype) -> int:
    # Packed-sublane multiple: 8 for 4-byte, 16 for 2-byte, 32 for 1-byte dtypes.
    return max(8, 32 // jnp.dtype(dtype).itemsize)


def _poisson_kernel(u_ref, x_ref, o_ref):
    """spike = (U <= x) elementwise; U are precomputed uniforms in [0, 1)."""
    x = x_ref[...].astype(jnp.float32)
    o_ref[...] = (u_ref[...] <= x).astype(o_ref.dtype)


def poisson_encode(x: jax.Array, key: jax.Array) -> jax.Array:
    """Pallas implementation of PoissonEncoder.forward (any input shape).

    Pass a fresh PRNG key per timestep, mirroring torch.rand_like drawing new
    randoms on every forward().
    """
    orig_shape = x.shape
    orig_dtype = x.dtype
    n = x.size

    # --- choose a lane-dense 2-D view, copy-free whenever possible ----------
    lane = None
    for cand in _LANES:
        if n % cand == 0:
            lane = cand
            break

    if lane is not None:                      # fast path: pure reshape, no pad
        rows = n // lane
        x2 = x.reshape(rows, lane)
        padded = False
    else:                                     # ragged tail: pad < lane elements
        lane = _LANES[0]
        rows = -(-n // lane)
        x2 = jnp.pad(jnp.ravel(x), (0, rows * lane - n)).reshape(rows, lane)
        padded = True

    # --- row tiling ----------------------------------------------------------
    sub = _sublane_multiple(orig_dtype)
    if rows <= sub:
        tm = rows                             # full-extent block (always legal)
    else:
        # >= 2 grid steps so ("parallel",) can shard across both v7x TensorCores.
        tm = min(_TM_MAX, _round_up(-(-rows // 2), sub))
    grid = (pl.cdiv(rows, tm),)

    blk = pl.BlockSpec((tm, lane), lambda i: (i, 0))
    out_shape = jax.ShapeDtypeStruct((rows, lane), orig_dtype)

    # Uniforms from JAX's threefry PRNG: exact U[0,1), identical on any backend.
    u = jax.random.uniform(key, (rows, lane), dtype=jnp.float32)

    itemsize = jnp.dtype(orig_dtype).itemsize
    cost = pl.CostEstimate(
        flops=rows * lane,
        transcendentals=0,
        bytes_accessed=rows * lane * (4 + 2 * itemsize),
    )

    out2 = pl.pallas_call(
        _poisson_kernel,
        out_shape=out_shape,
        grid=grid,
        in_specs=[blk, blk],
        out_specs=blk,
        compiler_params=pltpu.CompilerParams(
            dimension_semantics=("parallel",),
            vmem_limit_bytes=32 * 1024 * 1024,
        ),
        cost_estimate=cost,
    )(u, x2)

    if padded:
        return out2.reshape(-1)[:n].reshape(orig_shape)
    return out2.reshape(orig_shape)


if __name__ == "__main__":
    root = jax.random.PRNGKey(0)
    k_x, k_enc, k_x2, k_enc2 = jax.random.split(root, 4)

    # Small NCHW rate-coded intensities in [0, 1], consistent with the module.
    x = jax.random.uniform(k_x, (2, 4, 16, 16), dtype=jnp.float32)
    spikes = poisson_encode(x, k_enc)
    jax.block_until_ready(spikes)

    assert spikes.shape == x.shape
    assert spikes.dtype == x.dtype
    vals = jnp.unique(spikes)
    assert bool(jnp.all((vals == 0.0) | (vals == 1.0)))
    # Spike rate must track intensity: E[spike | x] = x.
    assert abs(float(jnp.mean(spikes)) - float(jnp.mean(x))) < 0.1

    # A lane-ragged shape exercises the padded path.
    x_odd = jax.random.uniform(k_x2, (3, 5, 7), dtype=jnp.float32)
    spikes_odd = poisson_encode(x_odd, k_enc2)
    jax.block_until_ready(spikes_odd)
    assert spikes_odd.shape == x_odd.shape
    assert spikes_odd.dtype == x_odd.dtype
    vals_odd = jnp.unique(spikes_odd)
    assert bool(jnp.all((vals_odd == 0.0) | (vals_odd == 1.0)))

    print("KERNEL_OK")
</pallas_src>

<mosaic_0001>
module attributes {stable_mosaic.version = 11 : i64} {
  func.func @_poisson_kernel(%arg0: i32, %arg1: memref<2x1024xf32, #tpu.memory_space<vmem>>, %arg2: memref<2x1024xf32, #tpu.memory_space<vmem>>, %arg3: memref<2x1024xf32, #tpu.memory_space<vmem>>) attributes {dimension_semantics = [#tpu.dimension_semantics<parallel>], iteration_bounds = array<i64: 1>, scalar_prefetch = 0 : i64, scratch_operands = 0 : i64, tpu.core_type = #tpu.core_type<tc>, window_params = [{transform_indices = @transform_0, window_bounds = array<i64: 2, 1024>}, {transform_indices = @transform_1, window_bounds = array<i64: 2, 1024>}, {transform_indices = @transform_2, window_bounds = array<i64: 2, 1024>}]} {
    %c0 = arith.constant 0 : index
    %c0_0 = arith.constant 0 : index
    %0 = vector.load %arg2[%c0, %c0_0] : memref<2x1024xf32, #tpu.memory_space<vmem>>, vector<2x1024xf32>
    %c0_1 = arith.constant 0 : index
    %c0_2 = arith.constant 0 : index
    %1 = vector.load %arg1[%c0_1, %c0_2] : memref<2x1024xf32, #tpu.memory_space<vmem>>, vector<2x1024xf32>
    %2 = arith.cmpf ole, %1, %0 : vector<2x1024xf32>
    %3 = arith.extui %2 : vector<2x1024xi1> to vector<2x1024xi32>
    %4 = arith.sitofp %3 : vector<2x1024xi32> to vector<2x1024xf32>
    %c0_3 = arith.constant 0 : index
    %c0_4 = arith.constant 0 : index
    %5 = vector.load %arg3[%c0_3, %c0_4] : memref<2x1024xf32, #tpu.memory_space<vmem>>, vector<2x1024xf32>
    tpu.vector_store %arg3[%c0_3, %c0_4], %4 {strides = array<i32>} : memref<2x1024xf32, #tpu.memory_space<vmem>>, vector<2x1024xf32>,
    return
  }
  func.func @transform_0(%arg0: i32) -> (i32, i32) {
    %c0_i32 = arith.constant 0 : i32
    %c0_i32_0 = arith.constant 0 : i32
    return %arg0, %c0_i32 : i32, i32
  }
  func.func @transform_1(%arg0: i32) -> (i32, i32) {
    %c0_i32 = arith.constant 0 : i32
    %c0_i32_0 = arith.constant 0 : i32
    return %arg0, %c0_i32 : i32, i32
  }
  func.func @transform_2(%arg0: i32) -> (i32, i32) {
    %c0_i32 = arith.constant 0 : i32
    %c0_i32_0 = arith.constant 0 : i32
    return %arg0, %c0_i32 : i32, i32
  }
}

</mosaic_0001>

<bundles_post_ra>
// kernel: tpu_custom_call.1
= control target key start
LH: loop header
LB: loop body
LE: loop exit
PB: predicated region body
PF: predicated region fallthrough
CT: control target
= control target key end

     0   :  { %7 = vsyncpa [#allocation3], 0  ;;  %s197_s0 = inlined_call_operand.hbm [shape: f32[2,1024], index: 0, kind: input, shape index: {}]   ;;  %s198_s1 = inlined_call_operand.hbm [shape: f32[2,1024], index: 1, kind: input, shape index: {}]   ;;  %s199_s2 = inlined_call_operand.hbm [shape: f32[2,1024], index: 2, kind: output, shape index: {}]  }
   0x1   :  { %8 = vsyncpa [#allocation6], 0 }
   0x2   :  { %9 = vsyncpa [#allocation4], 0  ;;  %s142_s9 = smov [#allocation2]   ;;  %s143_s11 = smov [#allocation5]  }
   0x3   :  { %s16_s10 = sshll.u32 %s142_s9, 4  ;;  %s26_s12 = sshll.u32 %s143_s11, 4  ;;  %s17_s10 = int_to_ptr.vmem [resolvable:$true] %s16_s10  ;;  %s27_s12 = int_to_ptr.vmem [resolvable:$true] %s26_s12 }
   0x4   :  { %s70_s15 = scalar_lea.hbm %s197_s0, 256 }
   0x5   :  { %p71_p0 = scmp.ne.s32.totalorder %s197_s0, %s70_s15  ;;  %p74_p1 = scmp.lt.u32.totalorder %s70_s15, %s197_s0 }
   0x7   :  { %p76_p2 = pnand %p74_p1, %p71_p0 }
   0x9   :  { %79 = shalt.err (!%p76_p2)
}
   0xa   :  { %s80_s20 = scalar_lea.vmem %s17_s10, 256  ;;  %p85_p4 = scmp.lt.s32.totalorder %s17_s10, %s17_s10 }
   0xb   :  { %p81_p3 = scmp.ne.s32.totalorder %s17_s10, %s80_s20  ;;  %p86_p5 = scmp.lt.s32.totalorder %s80_s20, %s80_s20 }
   0xd   :  { %p87_p6 = por %p86_p5, %p85_p4 }
   0xf   :  { %p88_p7 = pnand %p87_p6, %p81_p3 }
  0x11   :  { %91 = shalt.err (!%p88_p7)
}
  0x12   :  { %19 = dma.hbm_to_vmem [thread:$0]  %s197_s0, 256, %s17_s10, [#allocation3]  }
  0x13   :  { %s92_s25 = scalar_lea.hbm %s198_s1, 256 }
  0x14   :  { %p93_p8 = scmp.ne.s32.totalorder %s198_s1, %s92_s25  ;;  %p96_p9 = scmp.lt.u32.totalorder %s92_s25, %s198_s1 }
  0x16   :  { %p98_p10 = pnand %p96_p9, %p93_p8 }
  0x18   :  { %101 = shalt.err (!%p98_p10)
}
  0x19   :  { %s102_s30 = scalar_lea.vmem %s27_s12, 256  ;;  %p107_p12 = scmp.lt.s32.totalorder %s27_s12, %s27_s12 }
  0x1a   :  { %p103_p11 = scmp.ne.s32.totalorder %s27_s12, %s102_s30  ;;  %p108_p13 = scmp.lt.s32.totalorder %s102_s30, %s102_s30 }
  0x1c   :  { %p109_p0 = por %p108_p13, %p107_p12 }
  0x1e   :  { %p110_p1 = pnand %p109_p0, %p103_p11 }
  0x20   :  { %113 = shalt.err (!%p110_p1)
}
  0x21   :  { %29 = dma.hbm_to_vmem [thread:$0]  %s198_s1, 256, %s27_s12, [#allocation6]  }
  0x22   :  { %136 = dma.done.wait [#allocation3], 256  }
  0x23   :  { %137 = vsyncadd [#allocation3], 4294967040 }
  0x24   :  { %138 = dma.done.wait [#allocation6], 256  }
  0x25   :  { %139 = vsyncadd [#allocation6], 4294967040  ;;  %s144_s4 = smov [#allocation7]   ;;  %v36_v0 = vld [vmem:[#allocation5] sm:$0xff]  ;;  %v38_v1 = vld [vmem:[#allocation2] sm:$0xff]  ;;  %v145_v4 = vmov 0.0  }
  0x26   :  { %s54_s5 = sshll.u32 %s144_s4, 4  ;;  %v37_v2 = vld [vmem:[#allocation5 + $0x8] sm:$0xff]  ;;  %vm40_vm0 = vcmp.le.f32.partialorder %v38_v1, %v36_v0  ;;  %v39_v3 = vld [vmem:[#allocation2 + $0x8] sm:$0xff]  ;;  %s55_s5 = int_to_ptr.vmem [resolvable:$true] %s54_s5 }
  0x27   :  { %v64_v5 = vsel %vm40_vm0, 1.0, %v145_v4  ;;  %vm41_vm1 = vcmp.le.f32.partialorder %v39_v3, %v37_v2  ;;  %s114_s6 = scalar_lea.vmem %s55_s5, 256  ;;  %p119_p3 = scmp.lt.s32.totalorder %s55_s5, %s55_s5 }
  0x28   :  { %46 = vst [vmem:[#allocation7] sm:$0xff] %v64_v5  ;;  %v65_v6 = vsel %vm41_vm1, 1.0, %v145_v4  ;;  %p115_p2 = scmp.ne.s32.totalorder %s55_s5, %s114_s6  ;;  %p120_p4 = scmp.lt.s32.totalorder %s114_s6, %s114_s6 }
  0x29   :  { %47 = vst [vmem:[#allocation7 + $0x8] sm:$0xff] %v65_v6 }
  0x2a   :  { %p121_p5 = por %p120_p4, %p119_p3 }
  0x2c   :  { %p122_p6 = pnand %p121_p5, %p115_p2 }
  0x2e   :  { %125 = shalt.err (!%p122_p6)
}
  0x2f   :  { %s126_s8 = scalar_lea.hbm %s199_s2, 256 }
  0x30   :  { %p127_p7 = scmp.ne.s32.totalorder %s199_s2, %s126_s8  ;;  %p130_p8 = scmp.lt.u32.totalorder %s126_s8, %s199_s2 }
  0x32   :  { %p132_p9 = pnand %p130_p8, %p127_p7 }
  0x34   :  { %135 = shalt.err (!%p132_p9)
}
  0x35   :  { %57 = dma.vmem_to_hbm [thread:$0]  %s55_s5, 256, %s199_s2, [#allocation4]  }
  0x36   :  { %140 = dma.done.wait [#allocation4], 256  }
  0x37   :  { %141 = vsyncadd [#allocation4], 4294967040 }
  0x38   :  { %61 = vsyncpa [#allocation3], 1 }
  0x39   :  { %62 = vsyncpa [#allocation6], 1 }
  0x3a   :  { %63 = vsyncpa [#allocation4], 1 }

</bundles_post_ra>
